<compile_context>
chip_gen: v7x
topology: tpu7x:2x2x1
jax: 0.10.0
libtpu: 0.0.40
codegen_flags: <defaults>
</compile_context>

<pallas_src>
import functools

import jax
import jax.numpy as jnp
from jax import lax
from jax.experimental import pallas as pl
from jax.experimental.pallas import tpu as pltpu


def pointnet_kernel(B, N, n_enc, n_dec, eps, x_ref, *refs):
    """Whole forward pass on one VMEM-resident tile.

    refs = [ (W, gamma, beta)            * n_enc,          # encoder (bias cancelled by BN)
             (W_top, W_bot, gamma, beta),                   # decoder layer 0 (split weight)
             (W, gamma, beta)            * (n_dec - 1),     # remaining decoder layers
             W_final_padded, b_final_padded,
             out_ref ]
    """
    out_ref = refs[-1]
    p = refs[:-1]

    def mxu(a, w_ref):
        # bf16 operands on the MXU, f32 accumulation.
        return jnp.dot(a.astype(jnp.bfloat16), w_ref[...],
                       preferred_element_type=jnp.float32)

    def batchnorm_relu(z, g_ref, be_ref):
        # Train-mode BN folded into one per-channel scale/shift.
        # Per-channel sum / sum-of-squares via a ones-row matmul (MXU reduction).
        m = jnp.float32(z.shape[0])
        ones_row = jnp.ones((1, z.shape[0]), jnp.float32)
        s1 = jnp.dot(ones_row, z, preferred_element_type=jnp.float32)      # (1, C) sum
        s2 = jnp.dot(ones_row, z * z, preferred_element_type=jnp.float32)  # (1, C) sumsq
        mu = s1 / m
        var = jnp.maximum(s2 / m - mu * mu, 0.0)        # biased var; guard fp cancellation
        scale = g_ref[...] * lax.rsqrt(var + eps)
        shift = be_ref[...] - mu * scale
        return jnp.maximum(z * scale + shift, 0.0)      # BN affine + ReLU, one mul + one add

    h = x_ref[...].astype(jnp.float32)                  # (B*N, C_in), elementwise math in f32

    idx = 0
    # ---- encoder: Linear(no bias) -> BN -> ReLU ----
    for _ in range(n_enc):
        z = mxu(h, p[idx])
        h = batchnorm_relu(z, p[idx + 1], p[idx + 2])
        idx += 3

    # ---- global max pool + concat, folded into decoder layer 0 via split weight ----
    c_en = h.shape[-1]
    gmax = jnp.max(h.reshape(B, N, c_en), axis=1)       # (B, C_en)
    w_top_ref, w_bot_ref = p[idx], p[idx + 1]
    g_proj = jnp.dot(gmax.astype(jnp.bfloat16), w_bot_ref[...],
                     preferred_element_type=jnp.float32)          # (B, C_dec1), once per batch
    c1 = g_proj.shape[-1]
    g_bcast = jnp.broadcast_to(g_proj[:, None, :], (B, N, c1)).reshape(B * N, c1)
    z = mxu(h, w_top_ref) + g_bcast                     # == concat([h, gmax_rep]) @ W_dec0
    h = batchnorm_relu(z, p[idx + 2], p[idx + 3])
    idx += 4

    # ---- remaining decoder layers ----
    for _ in range(n_dec - 1):
        z = mxu(h, p[idx])
        h = batchnorm_relu(z, p[idx + 1], p[idx + 2])
        idx += 3

    # ---- final linear (bias kept; output lane-padded to 128) ----
    wf_ref, bf_ref = p[idx], p[idx + 1]
    out = mxu(h, wf_ref) + bf_ref[...]
    out_ref[...] = out.astype(out_ref.dtype)


def init_params(key, cs_en, cs_dec, num_classes):
    """PyTorch-faithful parameters: [(W, b, gamma, beta)] per Lin/BN pair + [W_final, b_final].

    Linear weights stored transposed as (in, out); biases / BN params as (1, C).
    """
    def linear(key, fan_in, fan_out):
        k1, k2 = jax.random.split(key)
        bound = float(fan_in) ** -0.5
        w = jax.random.uniform(k1, (fan_in, fan_out), jnp.float32, -bound, bound)
        b = jax.random.uniform(k2, (1, fan_out), jnp.float32, -bound, bound)
        return w, b

    def encoder(key, cs):
        ps = []
        for i in range(1, len(cs)):
            key, sub = jax.random.split(key)
            w, b = linear(sub, cs[i - 1], cs[i])
            gamma = jnp.ones((1, cs[i]), jnp.float32)   # BatchNorm1d weight init
            beta = jnp.zeros((1, cs[i]), jnp.float32)   # BatchNorm1d bias init
            ps += [w, b, gamma, beta]
        return key, ps

    key, enc_ps = encoder(key, cs_en)
    key, dec_ps = encoder(key, cs_dec)
    key, sub = jax.random.split(key)
    wf, bf = linear(sub, cs_dec[-1], num_classes)
    return enc_ps + dec_ps + [wf, bf]


def pointnet_forward(x, params, cs_en, cs_dec, num_classes):
    B, N, C = x.shape
    assert C == cs_en[0]
    assert cs_dec[0] == 2 * cs_en[-1]
    n_enc = len(cs_en) - 1
    n_dec = len(cs_dec) - 1

    # ---- algebraic / layout preprocessing of the PyTorch-style params ----
    LANES = 128
    out_pad = max(LANES, ((num_classes + LANES - 1) // LANES) * LANES)

    kernel_args = []
    idx = 0
    for li in range(n_enc + n_dec):
        w, _b, gamma, beta = params[idx:idx + 4]        # bias cancelled by train-mode BN
        idx += 4
        if li == n_enc:
            c_en = cs_en[-1]                            # split first decoder weight
            kernel_args += [w[:c_en].astype(jnp.bfloat16),
                            w[c_en:].astype(jnp.bfloat16), gamma, beta]
        else:
            kernel_args += [w.astype(jnp.bfloat16), gamma, beta]
    wf, bf = params[idx], params[idx + 1]
    wf_p = jnp.zeros((wf.shape[0], out_pad), jnp.float32).at[:, :num_classes].set(wf)
    bf_p = jnp.zeros((1, out_pad), jnp.float32).at[:, :num_classes].set(bf)
    kernel_args += [wf_p.astype(jnp.bfloat16), bf_p]

    flat_inputs = [x.reshape(B * N, C)] + kernel_args   # x in native dtype; kernel casts

    kernel = functools.partial(pointnet_kernel, B, N, n_enc, n_dec, 1e-5)

    out_flat = pl.pallas_call(
        kernel,
        out_shape=jax.ShapeDtypeStruct((B * N, out_pad), jnp.float32),
        in_specs=[pl.BlockSpec(memory_space=pltpu.MemorySpace.VMEM)
                  for _ in flat_inputs],
        out_specs=pl.BlockSpec(memory_space=pltpu.MemorySpace.VMEM),
        compiler_params=pltpu.CompilerParams(vmem_limit_bytes=64 * 1024 * 1024),
    )(*flat_inputs)

    return out_flat[:, :num_classes].reshape(B, N, num_classes)


if __name__ == "__main__":
    # Small shapes consistent with the module:
    #   cs_en = [3, 32, 64], cs_dec = [128, 64, 32] (128 == 2 * 64), num_classes = 20
    # N is a multiple of 8 so the in-kernel (B, N, C) reshape is sublane-tile aligned.
    B, N = 2, 8
    cs_en = [3, 32, 64]
    cs_dec = [128, 64, 32]
    num_classes = 20

    key = jax.random.PRNGKey(0)
    key, kx, kp = jax.random.split(key, 3)
    x = jax.random.normal(kx, (B, N, cs_en[0]), jnp.float32)
    params = init_params(kp, cs_en, cs_dec, num_classes)

    out = pointnet_forward(x, params, cs_en, cs_dec, num_classes)
    out = jax.block_until_ready(out)

    assert out.shape == (B, N, num_classes), out.shape
    print("KERNEL_OK")
</pallas_src>

<mosaic_0001>
module attributes {stable_mosaic.version = 11 : i64} {
  func.func @pointnet_kernel(%arg0: memref<16x3xf32, #tpu.memory_space<vmem>>, %arg1: memref<3x32xbf16, #tpu.memory_space<vmem>>, %arg2: memref<1x32xf32, #tpu.memory_space<vmem>>, %arg3: memref<1x32xf32, #tpu.memory_space<vmem>>, %arg4: memref<32x64xbf16, #tpu.memory_space<vmem>>, %arg5: memref<1x64xf32, #tpu.memory_space<vmem>>, %arg6: memref<1x64xf32, #tpu.memory_space<vmem>>, %arg7: memref<64x64xbf16, #tpu.memory_space<vmem>>, %arg8: memref<64x64xbf16, #tpu.memory_space<vmem>>, %arg9: memref<1x64xf32, #tpu.memory_space<vmem>>, %arg10: memref<1x64xf32, #tpu.memory_space<vmem>>, %arg11: memref<64x32xbf16, #tpu.memory_space<vmem>>, %arg12: memref<1x32xf32, #tpu.memory_space<vmem>>, %arg13: memref<1x32xf32, #tpu.memory_space<vmem>>, %arg14: memref<32x128xbf16, #tpu.memory_space<vmem>>, %arg15: memref<1x128xf32, #tpu.memory_space<vmem>>, %arg16: memref<16x128xf32, #tpu.memory_space<vmem>>) attributes {dimension_semantics = [], scalar_prefetch = 0 : i64, scratch_operands = 0 : i64, tpu.core_type = #tpu.core_type<tc>} {
    %c0 = arith.constant 0 : index
    %c0_0 = arith.constant 0 : index
    %0 = vector.load %arg0[%c0, %c0_0] : memref<16x3xf32, #tpu.memory_space<vmem>>, vector<16x3xf32>
    %1 = arith.truncf %0 : vector<16x3xf32> to vector<16x3xbf16>
    %c0_1 = arith.constant 0 : index
    %c0_2 = arith.constant 0 : index
    %2 = vector.load %arg1[%c0_1, %c0_2] : memref<3x32xbf16, #tpu.memory_space<vmem>>, vector<3x32xbf16>
    %cst = arith.constant dense<0.000000e+00> : vector<16x32xf32>
    %3 = tpu.matmul %1, %2, %cst {dimension_numbers = #tpu.dot_dimension_numbers<[1], [0], [0], [1], [0, 0, 1, 1], [], []>} : vector<16x3xbf16>, vector<3x32xbf16>, vector<16x32xf32> -> vector<16x32xf32>
    %cst_3 = arith.constant 1.000000e+00 : f32
    %4 = vector.broadcast %cst_3 : f32 to vector<1x16xf32>
    %cst_4 = arith.constant dense<0.000000e+00> : vector<1x32xf32>
    %5 = tpu.matmul %4, %3, %cst_4 {dimension_numbers = #tpu.dot_dimension_numbers<[1], [0], [0], [1], [0, 0, 1, 1], [], []>} : vector<1x16xf32>, vector<16x32xf32>, vector<1x32xf32> -> vector<1x32xf32>
    %6 = arith.mulf %3, %3 : vector<16x32xf32>
    %cst_5 = arith.constant dense<0.000000e+00> : vector<1x32xf32>
    %7 = tpu.matmul %4, %6, %cst_5 {dimension_numbers = #tpu.dot_dimension_numbers<[1], [0], [0], [1], [0, 0, 1, 1], [], []>} : vector<1x16xf32>, vector<16x32xf32>, vector<1x32xf32> -> vector<1x32xf32>
    %cst_6 = arith.constant 1.600000e+01 : f32
    %8 = vector.broadcast %cst_6 : f32 to vector<1x32xf32>
    %9 = arith.divf %5, %8 : vector<1x32xf32>
    %cst_7 = arith.constant 1.600000e+01 : f32
    %10 = vector.broadcast %cst_7 : f32 to vector<1x32xf32>
    %11 = arith.divf %7, %10 : vector<1x32xf32>
    %12 = arith.mulf %9, %9 : vector<1x32xf32>
    %13 = arith.subf %11, %12 : vector<1x32xf32>
    %cst_8 = arith.constant 0.000000e+00 : f32
    %14 = vector.broadcast %cst_8 : f32 to vector<1x32xf32>
    %15 = arith.maximumf %13, %14 : vector<1x32xf32>
    %c0_9 = arith.constant 0 : index
    %c0_10 = arith.constant 0 : index
    %16 = vector.load %arg2[%c0_9, %c0_10] : memref<1x32xf32, #tpu.memory_space<vmem>>, vector<1x32xf32>
    %cst_11 = arith.constant 9.99999974E-6 : f32
    %17 = vector.broadcast %cst_11 : f32 to vector<1x32xf32>
    %18 = arith.addf %15, %17 : vector<1x32xf32>
    %19 = math.rsqrt %18 : vector<1x32xf32>
    %20 = arith.mulf %16, %19 : vector<1x32xf32>
    %c0_12 = arith.constant 0 : index
    %c0_13 = arith.constant 0 : index
    %21 = vector.load %arg3[%c0_12, %c0_13] : memref<1x32xf32, #tpu.memory_space<vmem>>, vector<1x32xf32>
    %22 = arith.mulf %9, %20 : vector<1x32xf32>
    %23 = arith.subf %21, %22 : vector<1x32xf32>
    %24 = vector.broadcast %20 : vector<1x32xf32> to vector<16x32xf32>
    %25 = arith.mulf %3, %24 : vector<16x32xf32>
    %26 = vector.broadcast %23 : vector<1x32xf32> to vector<16x32xf32>
    %27 = arith.addf %25, %26 : vector<16x32xf32>
    %cst_14 = arith.constant 0.000000e+00 : f32
    %28 = vector.broadcast %cst_14 : f32 to vector<16x32xf32>
    %29 = arith.maximumf %27, %28 : vector<16x32xf32>
    %30 = arith.truncf %29 : vector<16x32xf32> to vector<16x32xbf16>
    %c0_15 = arith.constant 0 : index
    %c0_16 = arith.constant 0 : index
    %31 = vector.load %arg4[%c0_15, %c0_16] : memref<32x64xbf16, #tpu.memory_space<vmem>>, vector<32x64xbf16>
    %cst_17 = arith.constant dense<0.000000e+00> : vector<16x64xf32>
    %32 = tpu.matmul %30, %31, %cst_17 {dimension_numbers = #tpu.dot_dimension_numbers<[1], [0], [0], [1], [0, 0, 1, 1], [], []>} : vector<16x32xbf16>, vector<32x64xbf16>, vector<16x64xf32> -> vector<16x64xf32>
    %cst_18 = arith.constant 1.000000e+00 : f32
    %33 = vector.broadcast %cst_18 : f32 to vector<1x16xf32>
    %cst_19 = arith.constant dense<0.000000e+00> : vector<1x64xf32>
    %34 = tpu.matmul %33, %32, %cst_19 {dimension_numbers = #tpu.dot_dimension_numbers<[1], [0], [0], [1], [0, 0, 1, 1], [], []>} : vector<1x16xf32>, vector<16x64xf32>, vector<1x64xf32> -> vector<1x64xf32>
    %35 = arith.mulf %32, %32 : vector<16x64xf32>
    %cst_20 = arith.constant dense<0.000000e+00> : vector<1x64xf32>
    %36 = tpu.matmul %33, %35, %cst_20 {dimension_numbers = #tpu.dot_dimension_numbers<[1], [0], [0], [1], [0, 0, 1, 1], [], []>} : vector<1x16xf32>, vector<16x64xf32>, vector<1x64xf32> -> vector<1x64xf32>
    %cst_21 = arith.constant 1.600000e+01 : f32
    %37 = vector.broadcast %cst_21 : f32 to vector<1x64xf32>
    %38 = arith.divf %34, %37 : vector<1x64xf32>
    %cst_22 = arith.constant 1.600000e+01 : f32
    %39 = vector.broadcast %cst_22 : f32 to vector<1x64xf32>
    %40 = arith.divf %36, %39 : vector<1x64xf32>
    %41 = arith.mulf %38, %38 : vector<1x64xf32>
    %42 = arith.subf %40, %41 : vector<1x64xf32>
    %cst_23 = arith.constant 0.000000e+00 : f32
    %43 = vector.broadcast %cst_23 : f32 to vector<1x64xf32>
    %44 = arith.maximumf %42, %43 : vector<1x64xf32>
    %c0_24 = arith.constant 0 : index
    %c0_25 = arith.constant 0 : index
    %45 = vector.load %arg5[%c0_24, %c0_25] : memref<1x64xf32, #tpu.memory_space<vmem>>, vector<1x64xf32>
    %cst_26 = arith.constant 9.99999974E-6 : f32
    %46 = vector.broadcast %cst_26 : f32 to vector<1x64xf32>
    %47 = arith.addf %44, %46 : vector<1x64xf32>
    %48 = math.rsqrt %47 : vector<1x64xf32>
    %49 = arith.mulf %45, %48 : vector<1x64xf32>
    %c0_27 = arith.constant 0 : index
    %c0_28 = arith.constant 0 : index
    %50 = vector.load %arg6[%c0_27, %c0_28] : memref<1x64xf32, #tpu.memory_space<vmem>>, vector<1x64xf32>
    %51 = arith.mulf %38, %49 : vector<1x64xf32>
    %52 = arith.subf %50, %51 : vector<1x64xf32>
    %53 = vector.broadcast %49 : vector<1x64xf32> to vector<16x64xf32>
    %54 = arith.mulf %32, %53 : vector<16x64xf32>
    %55 = vector.broadcast %52 : vector<1x64xf32> to vector<16x64xf32>
    %56 = arith.addf %54, %55 : vector<16x64xf32>
    %cst_29 = arith.constant 0.000000e+00 : f32
    %57 = vector.broadcast %cst_29 : f32 to vector<16x64xf32>
    %58 = arith.maximumf %56, %57 : vector<16x64xf32>
    %59 = vector.shape_cast %58 : vector<16x64xf32> to vector<2x8x64xf32>
    %cst_30 = arith.constant dense<0xFF800000> : vector<2x64xf32>
    %60 = vector.multi_reduction <maximumf>, %59, %cst_30 [1] : vector<2x8x64xf32> to vector<2x64xf32>
    %61 = arith.truncf %60 : vector<2x64xf32> to vector<2x64xbf16>
    %c0_31 = arith.constant 0 : index
    %c0_32 = arith.constant 0 : index
    %62 = vector.load %arg8[%c0_31, %c0_32] : memref<64x64xbf16, #tpu.memory_space<vmem>>, vector<64x64xbf16>
    %cst_33 = arith.constant dense<0.000000e+00> : vector<2x64xf32>
    %63 = tpu.matmul %61, %62, %cst_33 {dimension_numbers = #tpu.dot_dimension_numbers<[1], [0], [0], [1], [0, 0, 1, 1], [], []>} : vector<2x64xbf16>, vector<64x64xbf16>, vector<2x64xf32> -> vector<2x64xf32>
    %64 = vector.shape_cast %63 : vector<2x64xf32> to vector<2x1x64xf32>
    %65 = vector.shape_cast %64 : vector<2x1x64xf32> to vector<2x1x64xf32>
    %66 = vector.broadcast %65 : vector<2x1x64xf32> to vector<2x8x64xf32>
    %67 = vector.shape_cast %66 : vector<2x8x64xf32> to vector<16x64xf32>
    %68 = arith.truncf %58 : vector<16x64xf32> to vector<16x64xbf16>
    %c0_34 = arith.constant 0 : index
    %c0_35 = arith.constant 0 : index
    %69 = vector.load %arg7[%c0_34, %c0_35] : memref<64x64xbf16, #tpu.memory_space<vmem>>, vector<64x64xbf16>
    %cst_36 = arith.constant dense<0.000000e+00> : vector<16x64xf32>
    %70 = tpu.matmul %68, %69, %cst_36 {dimension_numbers = #tpu.dot_dimension_numbers<[1], [0], [0], [1], [0, 0, 1, 1], [], []>} : vector<16x64xbf16>, vector<64x64xbf16>, vector<16x64xf32> -> vector<16x64xf32>
    %71 = arith.addf %70, %67 : vector<16x64xf32>
    %cst_37 = arith.constant 1.000000e+00 : f32
    %72 = vector.broadcast %cst_37 : f32 to vector<1x16xf32>
    %cst_38 = arith.constant dense<0.000000e+00> : vector<1x64xf32>
    %73 = tpu.matmul %72, %71, %cst_38 {dimension_numbers = #tpu.dot_dimension_numbers<[1], [0], [0], [1], [0, 0, 1, 1], [], []>} : vector<1x16xf32>, vector<16x64xf32>, vector<1x64xf32> -> vector<1x64xf32>
    %74 = arith.mulf %71, %71 : vector<16x64xf32>
    %cst_39 = arith.constant dense<0.000000e+00> : vector<1x64xf32>
    %75 = tpu.matmul %72, %74, %cst_39 {dimension_numbers = #tpu.dot_dimension_numbers<[1], [0], [0], [1], [0, 0, 1, 1], [], []>} : vector<1x16xf32>, vector<16x64xf32>, vector<1x64xf32> -> vector<1x64xf32>
    %cst_40 = arith.constant 1.600000e+01 : f32
    %76 = vector.broadcast %cst_40 : f32 to vector<1x64xf32>
    %77 = arith.divf %73, %76 : vector<1x64xf32>
    %cst_41 = arith.constant 1.600000e+01 : f32
    %78 = vector.broadcast %cst_41 : f32 to vector<1x64xf32>
    %79 = arith.divf %75, %78 : vector<1x64xf32>
    %80 = arith.mulf %77, %77 : vector<1x64xf32>
    %81 = arith.subf %79, %80 : vector<1x64xf32>
    %cst_42 = arith.constant 0.000000e+00 : f32
    %82 = vector.broadcast %cst_42 : f32 to vector<1x64xf32>
    %83 = arith.maximumf %81, %82 : vector<1x64xf32>
    %c0_43 = arith.constant 0 : index
    %c0_44 = arith.constant 0 : index
    %84 = vector.load %arg9[%c0_43, %c0_44] : memref<1x64xf32, #tpu.memory_space<vmem>>, vector<1x64xf32>
    %cst_45 = arith.constant 9.99999974E-6 : f32
    %85 = vector.broadcast %cst_45 : f32 to vector<1x64xf32>
    %86 = arith.addf %83, %85 : vector<1x64xf32>
    %87 = math.rsqrt %86 : vector<1x64xf32>
    %88 = arith.mulf %84, %87 : vector<1x64xf32>
    %c0_46 = arith.constant 0 : index
    %c0_47 = arith.constant 0 : index
    %89 = vector.load %arg10[%c0_46, %c0_47] : memref<1x64xf32, #tpu.memory_space<vmem>>, vector<1x64xf32>
    %90 = arith.mulf %77, %88 : vector<1x64xf32>
    %91 = arith.subf %89, %90 : vector<1x64xf32>
    %92 = vector.broadcast %88 : vector<1x64xf32> to vector<16x64xf32>
    %93 = arith.mulf %71, %92 : vector<16x64xf32>
    %94 = vector.broadcast %91 : vector<1x64xf32> to vector<16x64xf32>
    %95 = arith.addf %93, %94 : vector<16x64xf32>
    %cst_48 = arith.constant 0.000000e+00 : f32
    %96 = vector.broadcast %cst_48 : f32 to vector<16x64xf32>
    %97 = arith.maximumf %95, %96 : vector<16x64xf32>
    %98 = arith.truncf %97 : vector<16x64xf32> to vector<16x64xbf16>
    %c0_49 = arith.constant 0 : index
    %c0_50 = arith.constant 0 : index
    %99 = vector.load %arg11[%c0_49, %c0_50] : memref<64x32xbf16, #tpu.memory_space<vmem>>, vector<64x32xbf16>
    %cst_51 = arith.constant dense<0.000000e+00> : vector<16x32xf32>
    %100 = tpu.matmul %98, %99, %cst_51 {dimension_numbers = #tpu.dot_dimension_numbers<[1], [0], [0], [1], [0, 0, 1, 1], [], []>} : vector<16x64xbf16>, vector<64x32xbf16>, vector<16x32xf32> -> vector<16x32xf32>
    %cst_52 = arith.constant 1.000000e+00 : f32
    %101 = vector.broadcast %cst_52 : f32 to vector<1x16xf32>
    %cst_53 = arith.constant dense<0.000000e+00> : vector<1x32xf32>
    %102 = tpu.matmul %101, %100, %cst_53 {dimension_numbers = #tpu.dot_dimension_numbers<[1], [0], [0], [1], [0, 0, 1, 1], [], []>} : vector<1x16xf32>, vector<16x32xf32>, vector<1x32xf32> -> vector<1x32xf32>
    %103 = arith.mulf %100, %100 : vector<16x32xf32>
    %cst_54 = arith.constant dense<0.000000e+00> : vector<1x32xf32>
    %104 = tpu.matmul %101, %103, %cst_54 {dimension_numbers = #tpu.dot_dimension_numbers<[1], [0], [0], [1], [0, 0, 1, 1], [], []>} : vector<1x16xf32>, vector<16x32xf32>, vector<1x32xf32> -> vector<1x32xf32>
    %cst_55 = arith.constant 1.600000e+01 : f32
    %105 = vector.broadcast %cst_55 : f32 to vector<1x32xf32>
    %106 = arith.divf %102, %105 : vector<1x32xf32>
    %cst_56 = arith.constant 1.600000e+01 : f32
    %107 = vector.broadcast %cst_56 : f32 to vector<1x32xf32>
    %108 = arith.divf %104, %107 : vector<1x32xf32>
    %109 = arith.mulf %106, %106 : vector<1x32xf32>
    %110 = arith.subf %108, %109 : vector<1x32xf32>
    %cst_57 = arith.constant 0.000000e+00 : f32
    %111 = vector.broadcast %cst_57 : f32 to vector<1x32xf32>
    %112 = arith.maximumf %110, %111 : vector<1x32xf32>
    %c0_58 = arith.constant 0 : index
    %c0_59 = arith.constant 0 : index
    %113 = vector.load %arg12[%c0_58, %c0_59] : memref<1x32xf32, #tpu.memory_space<vmem>>, vector<1x32xf32>
    %cst_60 = arith.constant 9.99999974E-6 : f32
    %114 = vector.broadcast %cst_60 : f32 to vector<1x32xf32>
    %115 = arith.addf %112, %114 : vector<1x32xf32>
    %116 = math.rsqrt %115 : vector<1x32xf32>
    %117 = arith.mulf %113, %116 : vector<1x32xf32>
    %c0_61 = arith.constant 0 : index
    %c0_62 = arith.constant 0 : index
    %118 = vector.load %arg13[%c0_61, %c0_62] : memref<1x32xf32, #tpu.memory_space<vmem>>, vector<1x32xf32>
    %119 = arith.mulf %106, %117 : vector<1x32xf32>
    %120 = arith.subf %118, %119 : vector<1x32xf32>
    %121 = vector.broadcast %117 : vector<1x32xf32> to vector<16x32xf32>
    %122 = arith.mulf %100, %121 : vector<16x32xf32>
    %123 = vector.broadcast %120 : vector<1x32xf32> to vector<16x32xf32>
    %124 = arith.addf %122, %123 : vector<16x32xf32>
    %cst_63 = arith.constant 0.000000e+00 : f32
    %125 = vector.broadcast %cst_63 : f32 to vector<16x32xf32>
    %126 = arith.maximumf %124, %125 : vector<16x32xf32>
    %127 = arith.truncf %126 : vector<16x32xf32> to vector<16x32xbf16>
    %c0_64 = arith.constant 0 : index
    %c0_65 = arith.constant 0 : index
    %128 = vector.load %arg14[%c0_64, %c0_65] : memref<32x128xbf16, #tpu.memory_space<vmem>>, vector<32x128xbf16>
    %cst_66 = arith.constant dense<0.000000e+00> : vector<16x128xf32>
    %129 = tpu.matmul %127, %128, %cst_66 {dimension_numbers = #tpu.dot_dimension_numbers<[1], [0], [0], [1], [0, 0, 1, 1], [], []>} : vector<16x32xbf16>, vector<32x128xbf16>, vector<16x128xf32> -> vector<16x128xf32>
    %c0_67 = arith.constant 0 : index
    %c0_68 = arith.constant 0 : index
    %130 = vector.load %arg15[%c0_67, %c0_68] : memref<1x128xf32, #tpu.memory_space<vmem>>, vector<1x128xf32>
    %131 = vector.broadcast %130 : vector<1x128xf32> to vector<16x128xf32>
    %132 = arith.addf %129, %131 : vector<16x128xf32>
    %c0_69 = arith.constant 0 : index
    %c0_70 = arith.constant 0 : index
    %133 = vector.load %arg16[%c0_69, %c0_70] : memref<16x128xf32, #tpu.memory_space<vmem>>, vector<16x128xf32>
    tpu.vector_store %arg16[%c0_69, %c0_70], %132 {strides = array<i32>} : memref<16x128xf32, #tpu.memory_space<vmem>>, vector<16x128xf32>,
    return
  }
}

</mosaic_0001>

<bundles_post_ra>
// kernel: tpu_custom_call.1
= control target key start
LH: loop header
LB: loop body
LE: loop exit
PB: predicated region body
PF: predicated region fallthrough
CT: control target
= control target key end

     0   :  { %s2548_s0 = inlined_call_operand.hbm [shape: f32[16,3], index: 0, kind: input, shape index: {}]   ;;  %s2549_s1 = inlined_call_operand.hbm [shape: bf16[3,32], index: 1, kind: input, shape index: {}]   ;;  %s2550_s2 = inlined_call_operand.hbm [shape: f32[1,32], index: 2, kind: input, shape index: {}]   ;;  %s2551_s3 = inlined_call_operand.hbm [shape: f32[1,32], index: 3, kind: input, shape index: {}]   ;;  %s2552_s4 = inlined_call_operand.hbm [shape: bf16[32,64], index: 4, kind: input, shape index: {}]   ;;  %s2553_s5 = inlined_call_operand.hbm [shape: f32[1,64], index: 5, kind: input, shape index: {}]   ;;  %s2554_s6 = inlined_call_operand.hbm [shape: f32[1,64], index: 6, kind: input, shape index: {}]   ;;  %s2555_s7 = inlined_call_operand.hbm [shape: bf16[64,64], index: 7, kind: input, shape index: {}]   ;;  %s2556_s8 = inlined_call_operand.hbm [shape: bf16[64,64], index: 8, kind: input, shape index: {}]   ;;  %s2557_s9 = inlined_call_operand.hbm [shape: f32[1,64], index: 9, kind: input, shape index: {}]   ;;  %s2558_s10 = inlined_call_operand.hbm [shape: f32[1,64], index: 10, kind: input, shape index: {}]   ;;  %s2559_s11 = inlined_call_operand.hbm [shape: bf16[64,32], index: 11, kind: input, shape index: {}]   ;;  %s2560_s12 = inlined_call_operand.hbm [shape: f32[1,32], index: 12, kind: input, shape index: {}]   ;;  %s2561_s13 = inlined_call_operand.hbm [shape: f32[1,32], index: 13, kind: input, shape index: {}]   ;;  %s2562_s14 = inlined_call_operand.hbm [shape: bf16[32,128], index: 14, kind: input, shape index: {}]   ;;  %s2563_s15 = inlined_call_operand.hbm [shape: f32[1,128], index: 15, kind: input, shape index: {}]   ;;  %s2564_s16 = inlined_call_operand.hbm [shape: f32[16,128], index: 16, kind: output, shape index: {}]  }
   0x1   :  { %2566 = sst [smem:[#allocation39_spill]] %s2548_s0 }
   0x2   :  { %21 = vsyncpa [#allocation3], 0 }
   0x3   :  { %22 = vsyncpa [#allocation6], 0 }
   0x4   :  { %23 = vsyncpa [#allocation9], 0 }
   0x5   :  { %24 = vsyncpa [#allocation12], 0 }
   0x6   :  { %25 = vsyncpa [#allocation15], 0 }
   0x7   :  { %26 = vsyncpa [#allocation18], 0 }
   0x8   :  { %27 = vsyncpa [#allocation21], 0 }
   0x9   :  { %28 = vsyncpa [#allocation24], 0 }
   0xa   :  { %29 = vsyncpa [#allocation27], 0 }
   0xb   :  { %30 = vsyncpa [#allocation4], 0  ;;  %s2105_s21 = smov [#allocation5]   ;;  %s2106_s23 = smov [#allocation8]  }
   0xc   :  { %s49_s22 = sshll.u32 %s2105_s21, 4  ;;  %s69_s24 = sshll.u32 %s2106_s23, 4  ;;  %s50_s22 = int_to_ptr.vmem [resolvable:$true] %s49_s22  ;;  %s70_s24 = int_to_ptr.vmem [resolvable:$true] %s69_s24 }
   0xd   :  { %s1711_s27 = scalar_lea.hbm %s2549_s1, 32 }
   0xe   :  { %p1712_p0 = scmp.ne.s32.totalorder %s2549_s1, %s1711_s27  ;;  %p1715_p1 = scmp.lt.u32.totalorder %s1711_s27, %s2549_s1 }
  0x10   :  { %p1717_p2 = pnand %p1715_p1, %p1712_p0 }
  0x12   :  { %1720 = shalt.err (!%p1717_p2)
}
  0x13   :  { %s1721_s17 = scalar_lea.vmem %s50_s22, 32  ;;  %p1726_p4 = scmp.lt.s32.totalorder %s50_s22, %s50_s22 }
  0x14   :  { %p1722_p3 = scmp.ne.s32.totalorder %s50_s22, %s1721_s17  ;;  %p1727_p5 = scmp.lt.s32.totalorder %s1721_s17, %s1721_s17 }
  0x16   :  { %p1728_p6 = por %p1727_p5, %p1726_p4 }
  0x18   :  { %p1729_p7 = pnand %p1728_p6, %p1722_p3 }
  0x1a   :  { %1732 = shalt.err (!%p1729_p7)
}
  0x1b   :  { %52 = dma.hbm_to_vmem [thread:$0]  %s2549_s1, 32, %s50_s22, [#allocation6]  }
  0x1c   :  { %s1733_s23 = scalar_lea.hbm %s2551_s3, 16 }
  0x1d   :  { %p1734_p8 = scmp.ne.s32.totalorder %s2551_s3, %s1733_s23  ;;  %p1737_p9 = scmp.lt.u32.totalorder %s1733_s23, %s2551_s3 }
  0x1f   :  { %p1739_p10 = pnand %p1737_p9, %p1734_p8 }
  0x21   :  { %1742 = shalt.err (!%p1739_p10)
}
  0x22   :  { %s1743_s29 = scalar_lea.vmem %s70_s24, 16  ;;  %s1747_s30 = scalar_lea.vmem %s70_s24, 32 }
  0x23   :  { %p1744_p11 = scmp.ne.s32.totalorder %s70_s24, %s1743_s29  ;;  %p1748_p12 = scmp.lt.s32.totalorder %s70_s24, %s70_s24 }
  0x24   :  { %p1749_p13 = scmp.lt.s32.totalorder %s1747_s30, %s1743_s29 }
  0x26   :  { %p1750_p0 = por %p1749_p13, %p1748_p12 }
  0x28   :  { %p1751_p1 = pnand %p1750_p0, %p1744_p11 }
  0x2a   :  { %1754 = shalt.err (!%p1751_p1)
}
  0x2b   :  { %72 = dma.hbm_to_vmem [thread:$0]  %s2551_s3, 16, %s70_s24, [#allocation9]  }
  0x2c   :  { %s2107_s0 = smov [#allocation11]   ;;  %s1755_s20 = scalar_lea.hbm %s2553_s5, 16 }
  0x2d   :  { %s91_s17 = sshll.u32 %s2107_s0, 4  ;;  %p1756_p2 = scmp.ne.s32.totalorder %s2553_s5, %s1755_s20  ;;  %s92_s17 = int_to_ptr.vmem [resolvable:$true] %s91_s17 }
  0x2e   :  { %p1759_p3 = scmp.lt.u32.totalorder %s1755_s20, %s2553_s5 }
  0x30   :  { %p1761_p4 = pnand %p1759_p3, %p1756_p2 }
  0x32   :  { %1764 = shalt.err (!%p1761_p4)
}
  0x33   :  { %s1765_s27 = scalar_lea.vmem %s92_s17, 16  ;;  %s1769_s3 = scalar_lea.vmem %s92_s17, 32 }
  0x34   :  { %p1766_p5 = scmp.ne.s32.totalorder %s92_s17, %s1765_s27  ;;  %p1770_p6 = scmp.lt.s32.totalorder %s92_s17, %s92_s17 }
  0x35   :  { %p1771_p7 = scmp.lt.s32.totalorder %s1769_s3, %s1765_s27 }
  0x37   :  { %p1772_p8 = por %p1771_p7, %p1770_p6 }
  0x39   :  { %p1773_p9 = pnand %p1772_p8, %p1766_p5 }
  0x3b   :  { %1776 = shalt.err (!%p1773_p9)
}
  0x3c   :  { %94 = dma.hbm_to_vmem [thread:$0]  %s2553_s5, 16, %s92_s17, [#allocation12]  }
  0x3d   :  { %s2108_s29 = smov [#allocation14]   ;;  %s2109_s1 = smov [#allocation17]  }
  0x3e   :  { %s110_s30 = sshll.u32 %s2108_s29, 4  ;;  %s135_s22 = sshll.u32 %s2109_s1, 4  ;;  %s111_s30 = int_to_ptr.vmem [resolvable:$true] %s110_s30  ;;  %s136_s22 = int_to_ptr.vmem [resolvable:$true] %s135_s22 }
  0x3f   :  { %s1777_s19 = scalar_lea.hbm %s2555_s7, 512 }
  0x40   :  { %p1778_p10 = scmp.ne.s32.totalorder %s2555_s7, %s1777_s19  ;;  %p1781_p11 = scmp.lt.u32.totalorder %s1777_s19, %s2555_s7 }
  0x42   :  { %p1783_p12 = pnand %p1781_p11, %p1778_p10 }
  0x44   :  { %1786 = shalt.err (!%p1783_p12)
}
  0x45   :  { %s1787_s5 = scalar_lea.vmem %s111_s30, 512  ;;  %p1792_p0 = scmp.lt.s32.totalorder %s111_s30, %s111_s30 }
  0x46   :  { %p1788_p13 = scmp.ne.s32.totalorder %s111_s30, %s1787_s5  ;;  %p1793_p1 = scmp.lt.s32.totalorder %s1787_s5, %s1787_s5 }
  0x48   :  { %p1794_p2 = por %p1793_p1, %p1792_p0 }
  0x4a   :  { %p1795_p3 = pnand %p1794_p2, %p1788_p13 }
  0x4c   :  { %1798 = shalt.err (!%p1795_p3)
}
  0x4d   :  { %s2110_s17 = smov 64   ;;  %s2111_s26 = smov 4  }
  0x4e   :  { %116 = dma.hbm_to_vmem [thread:$0]  %s2555_s7, 512, %s111_s30, [#allocation15], %s2110_s17, %s2110_s17, %s2111_s26  }
  0x4f   :  { %s1799_s29 = scalar_lea.hbm %s2557_s9, 16 }
  0x50   :  { %p1800_p4 = scmp.ne.s32.totalorder %s2557_s9, %s1799_s29  ;;  %p1803_p5 = scmp.lt.u32.totalorder %s1799_s29, %s2557_s9 }
  0x52   :  { %p1805_p6 = pnand %p1803_p5, %p1800_p4 }
  0x54   :  { %1808 = shalt.err (!%p1805_p6)
}
  0x55   :  { %s1809_s20 = scalar_lea.vmem %s136_s22, 16  ;;  %s1813_s21 = scalar_lea.vmem %s136_s22, 32 }
  0x56   :  { %p1810_p7 = scmp.ne.s32.totalorder %s136_s22, %s1809_s20  ;;  %p1814_p8 = scmp.lt.s32.totalorder %s136_s22, %s136_s22 }
  0x57   :  { %p1815_p9 = scmp.lt.s32.totalorder %s1813_s21, %s1809_s20 }
  0x59   :  { %p1816_p10 = por %p1815_p9, %p1814_p8 }
  0x5b   :  { %p1817_p11 = pnand %p1816_p10, %p1810_p7 }
  0x5d   :  { %1820 = shalt.err (!%p1817_p11)
}
  0x5e   :  { %138 = dma.hbm_to_vmem [thread:$0]  %s2557_s9, 16, %s136_s22, [#allocation18]  }
  0x5f   :  { %s2112_s23 = smov [#allocation20]   ;;  %s2113_s5 = smov [#allocation23]  }
  0x60   :  { %s154_s25 = sshll.u32 %s2112_s23, 4  ;;  %s177_s27 = sshll.u32 %s2113_s5, 4  ;;  %s155_s25 = int_to_ptr.vmem [resolvable:$true] %s154_s25  ;;  %s178_s27 = int_to_ptr.vmem [resolvable:$true] %s177_s27 }
  0x61   :  { %s1821_s28 = scalar_lea.hbm %s2559_s11, 512 }
  0x62   :  { %p1822_p12 = scmp.ne.s32.totalorder %s2559_s11, %s1821_s28  ;;  %p1825_p13 = scmp.lt.u32.totalorder %s1821_s28, %s2559_s11 }
  0x64   :  { %p1827_p0 = pnand %p1825_p13, %p1822_p12 }
  0x66   :  { %1830 = shalt.err (!%p1827_p0)
}
  0x67   :  { %s1831_s9 = scalar_lea.vmem %s155_s25, 512  ;;  %p1836_p2 = scmp.lt.s32.totalorder %s155_s25, %s155_s25 }
  0x68   :  { %p1832_p1 = scmp.ne.s32.totalorder %s155_s25, %s1831_s9  ;;  %p1837_p3 = scmp.lt.s32.totalorder %s1831_s9, %s1831_s9 }
  0x6a   :  { %p1838_p4 = por %p1837_p3, %p1836_p2 }
  0x6c   :  { %p1839_p5 = pnand %p1838_p4, %p1832_p1 }
  0x6e   :  { %1842 = shalt.err (!%p1839_p5)
}
  0x6f   :  { %160 = dma.hbm_to_vmem [thread:$0]  %s2559_s11, 512, %s155_s25, [#allocation21], %s2110_s17, %s2110_s17, %s2111_s26  }
  0x70   :  { %s1843_s7 = scalar_lea.hbm %s2561_s13, 16 }
  0x71   :  { %p1844_p6 = scmp.ne.s32.totalorder %s2561_s13, %s1843_s7  ;;  %p1847_p7 = scmp.lt.u32.totalorder %s1843_s7, %s2561_s13 }
  0x73   :  { %p1849_p8 = pnand %p1847_p7, %p1844_p6 }
  0x75   :  { %1852 = shalt.err (!%p1849_p8)
}
  0x76   :  { %s1853_s24 = scalar_lea.vmem %s178_s27, 16  ;;  %s1857_s28 = scalar_lea.vmem %s178_s27, 32 }
  0x77   :  { %p1854_p9 = scmp.ne.s32.totalorder %s178_s27, %s1853_s24  ;;  %p1858_p10 = scmp.lt.s32.totalorder %s178_s27, %s178_s27 }
  0x78   :  { %p1859_p11 = scmp.lt.s32.totalorder %s1857_s28, %s1853_s24 }
  0x7a   :  { %p1860_p12 = por %p1859_p11, %p1858_p10 }
  0x7c   :  { %p1861_p13 = pnand %p1860_p12, %p1854_p9 }
  0x7e   :  { %1864 = shalt.err (!%p1861_p13)
}
  0x7f   :  { %180 = dma.hbm_to_vmem [thread:$0]  %s2561_s13, 16, %s178_s27, [#allocation24]  }
  0x80   :  { %s2114_s29 = smov [#allocation2]   ;;  %s2567_s9 = sld [smem:[#allocation39_spill]] }
  0x81   :  { %s36_s1 = sshll.u32 %s2114_s29, 4  ;;  %s37_s1 = int_to_ptr.vmem [resolvable:$true] %s36_s1 }
  0x86   :  { %s1865_s22 = scalar_lea.hbm %s2567_s9, 256 }
  0x87   :  { %p1866_p0 = scmp.ne.s32.totalorder %s2567_s9, %s1865_s22  ;;  %p1869_p1 = scmp.lt.u32.totalorder %s1865_s22, %s2567_s9 }
  0x89   :  { %p1871_p2 = pnand %p1869_p1, %p1866_p0 }
  0x8b   :  { %1874 = shalt.err (!%p1871_p2)
}
  0x8c   :  { %s1875_s30 = scalar_lea.vmem %s37_s1, 256  ;;  %p1880_p4 = scmp.lt.s32.totalorder %s37_s1, %s37_s1 }
  0x8d   :  { %p1876_p3 = scmp.ne.s32.totalorder %s37_s1, %s1875_s30  ;;  %p1881_p5 = scmp.lt.s32.totalorder %s1875_s30, %s1875_s30 }
  0x8f   :  { %p1882_p6 = por %p1881_p5, %p1880_p4 }
  0x91   :  { %p1883_p7 = pnand %p1882_p6, %p1876_p3 }
  0x93   :  { %1886 = shalt.err (!%p1883_p7)
}
  0x94   :  { %s2115_s13 = smov 128   ;;  %s2116_s27 = smov 8  }
  0x95   :  { %42 = dma.hbm_to_vmem [thread:$0]  %s2567_s9, 256, %s37_s1, [#allocation3], %s2115_s13, %s2115_s13, %s2116_s27  }
  0x96   :  { %s2117_s3 = smov [#allocation7]   ;;  %s2118_s28 = smov [#allocation10]  }
  0x97   :  { %s59_s24 = sshll.u32 %s2117_s3, 4  ;;  %s78_s11 = sshll.u32 %s2118_s28, 4  ;;  %s60_s24 = int_to_ptr.vmem [resolvable:$true] %s59_s24  ;;  %s2322_s11 = int_to_ptr.vmem [resolvable:$true] %s78_s11 }
  0x98   :  { %s1887_s0 = scalar_lea.hbm %s2550_s2, 16 }
  0x99   :  { %p1888_p8 = scmp.ne.s32.totalorder %s2550_s2, %s1887_s0  ;;  %p1891_p9 = scmp.lt.u32.totalorder %s1887_s0, %s2550_s2 }
  0x9b   :  { %p1893_p10 = pnand %p1891_p9, %p1888_p8 }
  0x9d   :  { %1896 = shalt.err (!%p1893_p10)
}
  0x9e   :  { %s1897_s1 = scalar_lea.vmem %s60_s24, 16  ;;  %s1901_s9 = scalar_lea.vmem %s60_s24, 32 }
  0x9f   :  { %p1898_p11 = scmp.ne.s32.totalorder %s60_s24, %s1897_s1  ;;  %p1902_p12 = scmp.lt.s32.totalorder %s60_s24, %s60_s24 }
  0xa0   :  { %p1903_p13 = scmp.lt.s32.totalorder %s1901_s9, %s1897_s1 }
  0xa2   :  { %p1904_p0 = por %p1903_p13, %p1902_p12 }
  0xa4   :  { %p1905_p1 = pnand %p1904_p0, %p1898_p11 }
  0xa6   :  { %1908 = shalt.err (!%p1905_p1)
}
  0xa7   :  { %62 = dma.hbm_to_vmem [thread:$0]  %s2550_s2, 16, %s60_s24, [#allocation6]  }
  0xa8   :  { %s1909_s5 = scalar_lea.hbm %s2552_s4, 256 }
  0xa9   :  { %p1910_p2 = scmp.ne.s32.totalorder %s2552_s4, %s1909_s5  ;;  %p1913_p3 = scmp.lt.u32.totalorder %s1909_s5, %s2552_s4 }
  0xab   :  { %p1915_p4 = pnand %p1913_p3, %p1910_p2 }
  0xad   :  { %1918 = shalt.err (!%p1915_p4)
}
  0xae   :  { %s1919_s0 = scalar_lea.vmem %s2322_s11, 256  ;;  %p1924_p6 = scmp.lt.s32.totalorder %s2322_s11, %s2322_s11 }
  0xaf   :  { %p1920_p5 = scmp.ne.s32.totalorder %s2322_s11, %s1919_s0  ;;  %p1925_p7 = scmp.lt.s32.totalorder %s1919_s0, %s1919_s0 }
  0xb1   :  { %p1926_p8 = por %p1925_p7, %p1924_p6 }
  0xb3   :  { %p1927_p9 = pnand %p1926_p8, %p1920_p5 }
  0xb5   :  { %1930 = shalt.err (!%p1927_p9)
}
  0xb6   :  { %84 = dma.hbm_to_vmem [thread:$0]  %s2552_s4, 256, %s2322_s11, [#allocation9], %s2110_s17, %s2110_s17, %s2111_s26  }
  0xb7   :  { %s2119_s18 = smov [#allocation13]   ;;  %s2120_s19 = smov [#allocation16]  }
  0xb8   :  { %s101_s22 = sshll.u32 %s2119_s18, 4  ;;  %s122_s20 = sshll.u32 %s2120_s19, 4  ;;  %s102_s22 = int_to_ptr.vmem [resolvable:$true] %s101_s22  ;;  %s2356_s20 = int_to_ptr.vmem [resolvable:$true] %s122_s20 }
  0xb9   :  { %s1931_s21 = scalar_lea.hbm %s2554_s6, 16 }
  0xba   :  { %p1932_p10 = scmp.ne.s32.totalorder %s2554_s6, %s1931_s21  ;;  %p1935_p11 = scmp.lt.u32.totalorder %s1931_s21, %s2554_s6 }
  0xbc   :  { %p1937_p12 = pnand %p1935_p11, %p1932_p10 }
  0xbe   :  { %1940 = shalt.err (!%p1937_p12)
}
  0xbf   :  { %s1941_s4 = scalar_lea.vmem %s102_s22, 16  ;;  %s1945_s11 = scalar_lea.vmem %s102_s22, 32 }
  0xc0   :  { %p1942_p13 = scmp.ne.s32.totalorder %s102_s22, %s1941_s4  ;;  %p1946_p0 = scmp.lt.s32.totalorder %s102_s22, %s102_s22 }
  0xc1   :  { %p1947_p1 = scmp.lt.s32.totalorder %s1945_s11, %s1941_s4 }
  0xc3   :  { %p1948_p2 = por %p1947_p1, %p1946_p0 }
  0xc5   :  { %p1949_p3 = pnand %p1948_p2, %p1942_p13 }
  0xc7   :  { %1952 = shalt.err (!%p1949_p3)
}
  0xc8   :  { %104 = dma.hbm_to_vmem [thread:$0]  %s2554_s6, 16, %s102_s22, [#allocation12]  }
  0xc9   :  { %s1953_s0 = scalar_lea.hbm %s2556_s8, 512 }
  0xca   :  { %p1954_p4 = scmp.ne.s32.totalorder %s2556_s8, %s1953_s0  ;;  %p1957_p5 = scmp.lt.u32.totalorder %s1953_s0, %s2556_s8 }
  0xcc   :  { %p1959_p6 = pnand %p1957_p5, %p1954_p4 }
  0xce   :  { %1962 = shalt.err (!%p1959_p6)
}
  0xcf   :  { %s1963_s1 = scalar_lea.vmem %s2356_s20, 512  ;;  %p1968_p8 = scmp.lt.s32.totalorder %s2356_s20, %s2356_s20 }
  0xd0   :  { %p1964_p7 = scmp.ne.s32.totalorder %s2356_s20, %s1963_s1  ;;  %p1969_p9 = scmp.lt.s32.totalorder %s1963_s1, %s1963_s1 }
  0xd2   :  { %p1970_p10 = por %p1969_p9, %p1968_p8 }
  0xd4   :  { %p1971_p11 = pnand %p1970_p10, %p1964_p7 }
  0xd6   :  { %1974 = shalt.err (!%p1971_p11)
}
  0xd7   :  { %128 = dma.hbm_to_vmem [thread:$0]  %s2556_s8, 512, %s2356_s20, [#allocation15], %s2110_s17, %s2110_s17, %s2111_s26  }
  0xd8   :  { %s2121_s9 = smov [#allocation19]   ;;  %s2122_s7 = smov [#allocation22]  }
  0xd9   :  { %s145_s21 = sshll.u32 %s2121_s9, 4  ;;  %s167_s30 = sshll.u32 %s2122_s7, 4  ;;  %s146_s21 = int_to_ptr.vmem [resolvable:$true] %s145_s21  ;;  %s168_s30 = int_to_ptr.vmem [resolvable:$true] %s167_s30 }
  0xda   :  { %s1975_s4 = scalar_lea.hbm %s2558_s10, 16 }
  0xdb   :  { %p1976_p12 = scmp.ne.s32.totalorder %s2558_s10, %s1975_s4  ;;  %p1979_p13 = scmp.lt.u32.totalorder %s1975_s4, %s2558_s10 }
  0xdd   :  { %p1981_p0 = pnand %p1979_p13, %p1976_p12 }
  0xdf   :  { %1984 = shalt.err (!%p1981_p0)
}
  0xe0   :  { %s1985_s8 = scalar_lea.vmem %s146_s21, 16  ;;  %s1989_s20 = scalar_lea.vmem %s146_s21, 32 }
  0xe1   :  { %p1986_p1 = scmp.ne.s32.totalorder %s146_s21, %s1985_s8  ;;  %p1990_p2 = scmp.lt.s32.totalorder %s146_s21, %s146_s21 }
  0xe2   :  { %p1991_p3 = scmp.lt.s32.totalorder %s1989_s20, %s1985_s8 }
  0xe4   :  { %p1992_p4 = por %p1991_p3, %p1990_p2 }
  0xe6   :  { %p1993_p5 = pnand %p1992_p4, %p1986_p1 }
  0xe8   :  { %1996 = shalt.err (!%p1993_p5)
}
  0xe9   :  { %148 = dma.hbm_to_vmem [thread:$0]  %s2558_s10, 16, %s146_s21, [#allocation18]  }
  0xea   :  { %s1997_s18 = scalar_lea.hbm %s2560_s12, 16 }
  0xeb   :  { %p1998_p6 = scmp.ne.s32.totalorder %s2560_s12, %s1997_s18  ;;  %p2001_p7 = scmp.lt.u32.totalorder %s1997_s18, %s2560_s12 }
  0xed   :  { %p2003_p8 = pnand %p2001_p7, %p1998_p6 }
  0xef   :  { %2006 = shalt.err (!%p2003_p8)
}
  0xf0   :  { %s2007_s9 = scalar_lea.vmem %s168_s30, 16  ;;  %s2011_s7 = scalar_lea.vmem %s168_s30, 32 }
  0xf1   :  { %p2008_p9 = scmp.ne.s32.totalorder %s168_s30, %s2007_s9  ;;  %p2012_p10 = scmp.lt.s32.totalorder %s168_s30, %s168_s30 }
  0xf2   :  { %p2013_p11 = scmp.lt.s32.totalorder %s2011_s7, %s2007_s9 }
  0xf4   :  { %p2014_p12 = por %p2013_p11, %p2012_p10 }
  0xf6   :  { %p2015_p13 = pnand %p2014_p12, %p2008_p9 }
  0xf8   :  { %2018 = shalt.err (!%p2015_p13)
}
  0xf9   :  { %170 = dma.hbm_to_vmem [thread:$0]  %s2560_s12, 16, %s168_s30, [#allocation21]  }
  0xfa   :  { %s2123_s23 = smov [#allocation25]   ;;  %s2124_s4 = smov [#allocation26]  }
  0xfb   :  { %s186_s5 = sshll.u32 %s2123_s23, 4  ;;  %s199_s11 = sshll.u32 %s2124_s4, 4  ;;  %s187_s5 = int_to_ptr.vmem [resolvable:$true] %s186_s5  ;;  %s200_s11 = int_to_ptr.vmem [resolvable:$true] %s199_s11 }
  0xfc   :  { %s2019_s25 = scalar_lea.hbm %s2562_s14, 256 }
  0xfd   :  { %p2020_p0 = scmp.ne.s32.totalorder %s2562_s14, %s2019_s25  ;;  %p2023_p1 = scmp.lt.u32.totalorder %s2019_s25, %s2562_s14 }
  0xff   :  { %p2025_p2 = pnand %p2023_p1, %p2020_p0 }
 0x101   :  { %2028 = shalt.err (!%p2025_p2)
}
 0x102   :  { %s2029_s12 = scalar_lea.vmem %s187_s5, 256  ;;  %p2034_p4 = scmp.lt.s32.totalorder %s187_s5, %s187_s5 }
 0x103   :  { %p2030_p3 = scmp.ne.s32.totalorder %s187_s5, %s2029_s12  ;;  %p2035_p5 = scmp.lt.s32.totalorder %s2029_s12, %s2029_s12 }
 0x105   :  { %p2036_p6 = por %p2035_p5, %p2034_p4 }
 0x107   :  { %p2037_p7 = pnand %p2036_p6, %p2030_p3 }
 0x109   :  { %2040 = shalt.err (!%p2037_p7)
}
 0x10a   :  { %192 = dma.hbm_to_vmem [thread:$0]  %s2562_s14, 256, %s187_s5, [#allocation24], %s2110_s17, %s2110_s17, %s2111_s26  }
 0x10b   :  { %s2041_s19 = scalar_lea.hbm %s2563_s15, 16 }
 0x10c   :  { %p2042_p8 = scmp.ne.s32.totalorder %s2563_s15, %s2041_s19  ;;  %p2045_p9 = scmp.lt.u32.totalorder %s2041_s19, %s2563_s15 }
 0x10e   :  { %p2047_p10 = pnand %p2045_p9, %p2042_p8 }
 0x110   :  { %2050 = shalt.err (!%p2047_p10)
}
 0x111   :  { %s2051_s7 = scalar_lea.vmem %s200_s11, 16  ;;  %s2055_s10 = scalar_lea.vmem %s200_s11, 32 }
 0x112   :  { %p2052_p11 = scmp.ne.s32.totalorder %s200_s11, %s2051_s7  ;;  %p2056_p12 = scmp.lt.s32.totalorder %s200_s11, %s200_s11 }
 0x113   :  { %p2057_p13 = scmp.lt.s32.totalorder %s2055_s10, %s2051_s7 }
 0x115   :  { %p2058_p0 = por %p2057_p13, %p2056_p12 }
 0x117   :  { %p2059_p1 = pnand %p2058_p0, %p2052_p11 }
 0x119   :  { %2062 = shalt.err (!%p2059_p1)
}
 0x11a   :  { %202 = dma.hbm_to_vmem [thread:$0]  %s2563_s15, 16, %s200_s11, [#allocation27]  }
 0x11b   :  { %2085 = dma.done.wait [#allocation3], 256  }
 0x11c   :  { %2086 = vsyncadd [#allocation3], 4294967040 }
 0x11d   :  { %2087 = dma.done.wait [#allocation6], 48  }
 0x11e   :  { %2088 = vsyncadd [#allocation6], 4294967248 }
 0x11f   :  { %2089 = dma.done.wait [#allocation9], 272  }
 0x120   :  { %2090 = vsyncadd [#allocation9], 4294967024 }
 0x121   :  { %2091 = dma.done.wait [#allocation12], 32  }
 0x122   :  { %2092 = vsyncadd [#allocation12], 4294967264 }
 0x123   :  { %2093 = dma.done.wait [#allocation15], 1024  }
 0x124   :  { %2094 = vsyncadd [#allocation15], 4294966272 }
 0x125   :  { %2095 = dma.done.wait [#allocation18], 32  }
 0x126   :  { %2096 = vsyncadd [#allocation18], 4294967264 }
 0x127   :  { %2097 = dma.done.wait [#allocation21], 528  }
 0x128   :  { %2098 = vsyncadd [#allocation21], 4294966768 }
 0x129   :  { %2099 = dma.done.wait [#allocation24], 272  }
 0x12a   :  { %2100 = vsyncadd [#allocation24], 4294967024 }
 0x12b   :  { %2101 = dma.done.wait [#allocation27], 16  }
 0x12c   :  { %2102 = vsyncadd [#allocation27], 4294967280  ;;  %vm260_vm0 = vcmask 1040384   ;;  %v2125_v0 = vmov 0.0   ;;  %vm261_vm1 = vcmask 1041408   ;;  %v2126_v1 = vmov 65535  }
 0x12d   :  { %1522 = vmatprep.subr.bf16.mxu0 %v2125_v0  ;;  %v262_v2 = vsel %vm260_vm0, 4294967295, %v2126_v1  ;;  %vm2127_vm2 = vmmov 0   ;;  %v255_v4 = vld [vmem:[#allocation5] sm:$0x3]  ;;  %v252_v5 = vld [vmem:[#allocation2] sm:$0xff]  ;;  %v253_v6 = vld [vmem:[#allocation2 + $0x8] sm:$0xff]  ;;  %v468_v31 = vlaneseq }
 0x12e   :  { %1524 = vmatprep.mubr.msk.bf16.mxu0 %vm2127_vm2, %v2125_v0  ;;  %1532 = vmatprep.mubr.msk.f32.mxu1 %vm2127_vm2, %v2125_v0  ;;  %v263_v3 = vsel %vm261_vm1, %v262_v2, 0  ;;  %vm256_vm3 = vcmask 23552   ;;  %v254_v8 = vpack.c.bf16 %v253_v6, %v252_v5  ;;  %v2128_v9 = vmov 0.0|0.0   ;;  %v1687_v19 = vld [vmem:[#allocation10] sm:$0xff]   ;;  %v1688_v20 = vld [vmem:[#allocation10 + $0x8] sm:$0xff]   ;;  %v1689_v57 = vld [vmem:[#allocation14] sm:$0xff]  }
 0x12f   :  { %v265_v7 = vand.u32 %v263_v3, %v255_v4  ;;  %1636 = vmatprep.subr.bf16.mxu1 %v2128_v9  ;;  %vm308_vm4 = vcmask 130048   ;;  %v2129_v18 = vmov 1.0   ;;  %v2462_v32 = vshrl.u32 %v468_v31, 7  ;;  %v460_v33 = vld [vmem:[#allocation7] sm:$0x1]  ;;  %v1691_v59 = vld [vmem:[#allocation14 + $0x10] sm:$0xff]  }
 0x130   :  { %v464_v37 = vld [vmem:[#allocation8] sm:$0x1]  ;;  %vm502_vm5 = vcmask 261120   ;;  %v1692_v60 = vld [vmem:[#allocation14 + $0x18] sm:$0xff]   ;;  %v1693_v61 = vld [vmem:[#allocation16] sm:$0xff]   ;;  %vm719_vm6 = vcmask 523264  }
 0x131   :  { %1523 = vmatpush3.bf16.msra.mxu0 %v265_v7  ;;  %v2465_v34 = vsub.s32 0, %v2462_v32  ;;  %v1690_v58 = vld [vmem:[#allocation14 + $0x8] sm:$0xff]   ;;  %v1695_v63 = vld [vmem:[#allocation16 + $0x10] sm:$0xff]   ;;  %v1696_v1 = vld [vmem:[#allocation16 + $0x18] sm:$0xff]   ;;  %vm748_vm7 = vcmask 1041409   ;;  %s2131_s15 = smov [#allocation28]  }
 0x132   :  { %1542 = vmatprep.subr.bf16.mxu0 %v2125_v0  ;;  %v1694_v62 = vld [vmem:[#allocation16 + $0x8] sm:$0xff]   ;;  %s1424_s26 = sshll.u32 %s2131_s15, 4  ;;  %s1425_s26 = int_to_ptr.vmem [resolvable:$true] %s1424_s26 }
 0x133   :  { %s2063_s21 = scalar_lea.vmem %s1425_s26, 256  ;;  %p2068_p3 = scmp.lt.s32.totalorder %s1425_s26, %s1425_s26 }
 0x134   :  { %1525 = vmatmul.mubr.msk.bf16.vlgmr.msra.gmra.mrb[0].mxu0 %vm256_vm3, %v254_v8  ;;  %p2064_p2 = scmp.ne.s32.totalorder %s1425_s26, %s2063_s21  ;;  %p2069_p4 = scmp.lt.s32.totalorder %s2063_s21, %s2063_s21 }
 0x135   :  { %1546 = vmatprep.mubr.msk.bf16.mxu0 %vm2127_vm2, %v2125_v0  ;;  %1543 = vmatpush3.bf16.msra.mxu0 %v1687_v19 }
 0x136   :  { %1544 = vmatprep.subr.bf16.mxu0 %v2125_v0  ;;  %p2070_p5 = por %p2069_p4, %p2068_p3 }
 0x138   :  { %p2071_p6 = pnand %p2070_p5, %p2064_p2 }
 0x139   :  { %1545 = vmatpush3.bf16.msra.mxu0 %v1688_v20 }
 0x13a   :  { %1564 = vmatprep.subr.bf16.mxu0 %v2125_v0 }
 0x207   :  { %v301_v10 = vpop.f32.mrb[0].mxu0 }
 0x208   :  { %v1526_v11 = vpop.f32.mrb[1].mxu0  ;;  %v382_v13 = vmul.f32 %v301_v10, %v301_v10 }
 0x209   :  { %v304_v12 = vpop.f32.mrb[2].mxu0 }
 0x20a   :  { %v383_v14 = vmul.f32 %v304_v12, %v304_v12  ;;  %v1527_v15 = vpop.f32.mrb[3].mxu0  ;;  %v1637_v16 = vpack.c.bf16 %v304_v12, %v301_v10 }
 0x20c   :  { %v1640_v17 = vpack.c.bf16 %v383_v14, %v382_v13  ;;  %1638 = vmatpush3.bf16.msra.mxu1 %v1637_v16  ;;  %v694_v13 = vld [vmem:[#allocation11] sm:$0x1]  ;;  %v698_v16 = vld [vmem:[#allocation13] sm:$0x1] }
 0x20d   :  { %1639 = vmatprep.subr.bf16.mxu1 %v2128_v9 }
 0x20f   :  { %1533 = vmatmul.mubr.msk.f32.vlgmr.msra.gmra.mrb[0].mxu1 %vm308_vm4, %v2129_v18 }
 0x210   :  { %1641 = vmatpush3.bf16.msra.mxu1 %v1640_v17  ;;  %1539 = vmatprep.mubr.msk.f32.mxu1 %vm2127_vm2, %v2125_v0 }
 0x211   :  { %1642 = vmatprep.subr.bf16.mxu1 %v2128_v9 }
 0x213   :  { %1540 = vmatmul.mubr.msk.f32.vlgmr.msra.gmra.mrb[2].mxu1 %vm308_vm4, %v2129_v18 }
 0x214   :  { %1554 = vmatprep.mubr.msk.f32.mxu1 %vm2127_vm2, %v2125_v0 }
 0x2e2   :  { %v378_v21 = vpop.f32.mrb[0].mxu1 }
 0x2e3   :  { %v455_v22 = vmul.f32 0.0625, %v378_v21  ;;  %v1534_v23 = vpop.f32.mrb[1].mxu1 }
 0x2e5   :  { %v457_v25 = vmul.f32 %v455_v22, %v455_v22 }
 0x2e6   :  { %v450_v24 = vpop.f32.mrb[2].mxu1 }
 0x2e7   :  { %v456_v26 = vmul.f32 0.0625, %v450_v24  ;;  %v1541_v27 = vpop.f32.mrb[3].mxu1 }
 0x2e9   :  { %v458_v28 = vsub.f32 %v456_v26, %v457_v25 }
 0x2eb   :  { %v459_v29 = vmax.f32 %v458_v28, 0.0 }
 0x2ed   :  { %v461_v30 = vadd.f32 1e-05, %v459_v29 }
 0x2ef   :  { %1703 = vrsqrt.f32 %v461_v30 }
 0x2f9   :  { %v1704_v35 = vpop.eup %1703 }
 0x2fa   :  { %v463_v36 = vmul.f32 %v1704_v35, %v460_v33 }
 0x2fc   :  { %v465_v38 = vmul.f32 %v463_v36, %v455_v22  ;;  %v471_v39 = vrot.slane %v463_v36, %v2465_v34 }
 0x2fe   :  { %v466_v40 = vsub.f32 %v464_v37, %v465_v38  ;;  %v473_v41 = vmul.f32 %v471_v39, %v301_v10  ;;  %v474_v42 = vmul.f32 %v471_v39, %v304_v12 }
 0x300   :  { %v479_v43 = vrot.slane %v466_v40, %v2465_v34 }
 0x302   :  { %v481_v44 = vadd.f32 %v479_v43, %v473_v41  ;;  %v482_v45 = vadd.f32 %v479_v43, %v474_v42 }
 0x304   :  { %v483_v46 = vmax.f32 %v481_v44, 0.0  ;;  %v484_v47 = vmax.f32 %v482_v45, 0.0 }
 0x306   :  { %v485_v48 = vpack.c.bf16 %v484_v47, %v483_v46 }
 0x308   :  { %1547 = vmatmul.mubr.msk.bf16.vlgmr.msra.gmra.mrb[4].mxu0 %vm502_vm5, %v485_v48 }
 0x309   :  { %1572 = vmatprep.mubr.msk.bf16.mxu0 %vm2127_vm2, %v2125_v0  ;;  %1565 = vmatpush3.bf16.msra.mxu0 %v1693_v61 }
 0x30a   :  { %1566 = vmatprep.subr.bf16.mxu0 %v2125_v0 }
 0x30d   :  { %1567 = vmatpush3.bf16.msra.mxu0 %v1694_v62 }
 0x30e   :  { %1568 = vmatprep.subr.bf16.mxu0 %v2125_v0 }
 0x311   :  { %1569 = vmatpush3.bf16.msra.mxu0 %v1695_v63 }
 0x312   :  { %1570 = vmatprep.subr.bf16.mxu0 %v2125_v0 }
 0x315   :  { %1571 = vmatpush3.bf16.msra.mxu0 %v1696_v1 }
 0x316   :  { %1648 = vmatprep.subr.bf16.mxu0 %v2128_v9 }
 0x3db   :  { %v540_v49 = vpop.f32.mrb[4].mxu0 }
 0x3dc   :  { %v1548_v50 = vpop.f32.mrb[5].mxu0  ;;  %v617_v52 = vmul.f32 %v540_v49, %v540_v49 }
 0x3dd   :  { %v543_v51 = vpop.f32.mrb[6].mxu0 }
 0x3de   :  { %v1643_v53 = vpack.c.bf16 %v543_v51, %v540_v49  ;;  %v618_v54 = vmul.f32 %v543_v51, %v543_v51  ;;  %v1549_v55 = vpop.f32.mrb[7].mxu0 }
 0x3df   :  { %v2130_v55 = vmov 1966171168  }
 0x3e0   :  { %v1646_v56 = vpack.c.bf16 %v618_v54, %v617_v52  ;;  %1644 = vmatpush3.bf16.msra.mxu1 %v1643_v53 }
 0x3e1   :  { %1645 = vmatprep.subr.bf16.mxu1 %v2128_v9 }
 0x3e3   :  { %1555 = vmatmul.mubr.msk.f32.vlgmr.msra.gmra.mrb[4].mxu1 %vm308_vm4, %v2129_v18 }
 0x3e4   :  { %1647 = vmatpush3.bf16.msra.mxu1 %v1646_v56  ;;  %1561 = vmatprep.mubr.msk.f32.mxu1 %vm2127_vm2, %v2125_v0  ;;  %v820_v56 = vunpack.c.l.s4 %v2130_v55 }
 0x3e5   :  { %1576 = vmatprep.subr.bf16.mxu1 %v2125_v0 }
 0x3e7   :  { %1562 = vmatmul.mubr.msk.f32.vlgmr.msra.gmra.mrb[6].mxu1 %vm308_vm4, %v2129_v18 }
 0x3e8   :  { %1584 = vmatprep.mubr.msk.bf16.mxu1 %vm2127_vm2, %v2125_v0  ;;  %1577 = vmatpush3.bf16.msra.mxu1 %v1689_v57  ;;  %v821_v57 = vunpack.c.0.s8 %v820_v56 }
 0x3e9   :  { %1578 = vmatprep.subr.bf16.mxu1 %v2125_v0 }
 0x3ec   :  { %1579 = vmatpush3.bf16.msra.mxu1 %v1690_v58  ;;  %v824_v58 = vsub.s32 %v821_v57, %v2462_v32 }
 0x3ed   :  { %1580 = vmatprep.subr.bf16.mxu1 %v2125_v0 }
 0x3f0   :  { %1581 = vmatpush3.bf16.msra.mxu1 %v1691_v59 }
 0x3f1   :  { %1582 = vmatprep.subr.bf16.mxu1 %v2125_v0 }
 0x3f4   :  { %1583 = vmatpush3.bf16.msra.mxu1 %v1692_v60 }
 0x3f5   :  { %1602 = vmatprep.subr.bf16.mxu1 %v2125_v0 }
 0x4b6   :  { %v613_v2 = vpop.f32.mrb[4].mxu1 }
 0x4b7   :  { %v689_v3 = vmul.f32 0.0625, %v613_v2  ;;  %v1556_v4 = vpop.f32.mrb[5].mxu1 }
 0x4b9   :  { %v691_v6 = vmul.f32 %v689_v3, %v689_v3 }
 0x4ba   :  { %v685_v5 = vpop.f32.mrb[6].mxu1 }
 0x4bb   :  { %v690_v7 = vmul.f32 0.0625, %v685_v5  ;;  %v1563_v8 = vpop.f32.mrb[7].mxu1 }
 0x4bd   :  { %v692_v10 = vsub.f32 %v690_v7, %v691_v6 }
 0x4bf   :  { %v693_v11 = vmax.f32 %v692_v10, 0.0 }
 0x4c1   :  { %v695_v12 = vadd.f32 1e-05, %v693_v11 }
 0x4c3   :  { %1705 = vrsqrt.f32 %v695_v12  ;;  %v1697_v12 = vld [vmem:[#allocation20] sm:$0xff]  }
 0x4cd   :  { %v1706_v14 = vpop.eup %1705 }
 0x4ce   :  { %v697_v15 = vmul.f32 %v1706_v14, %v694_v13  ;;  %v1698_v13 = vld [vmem:[#allocation20 + $0x8] sm:$0xff]   ;;  %v1699_v14 = vld [vmem:[#allocation20 + $0x10] sm:$0xff]  }
 0x4d0   :  { %v699_v17 = vmul.f32 %v697_v15, %v689_v3  ;;  %v705_v19 = vrot.slane %v697_v15, %v2465_v34  ;;  %v1700_v15 = vld [vmem:[#allocation20 + $0x18] sm:$0xff]  }
 0x4d2   :  { %v700_v20 = vsub.f32 %v698_v16, %v699_v17  ;;  %v707_v21 = vmul.f32 %v705_v19, %v540_v49  ;;  %v708_v22 = vmul.f32 %v705_v19, %v543_v51 }
 0x4d4   :  { %v713_v23 = vrot.slane %v700_v20, %v2465_v34 }
 0x4d6   :  { %v715_v24 = vadd.f32 %v713_v23, %v707_v21  ;;  %v716_v25 = vadd.f32 %v713_v23, %v708_v22 }
 0x4d8   :  { %v717_v26 = vmax.f32 %v715_v24, 0.0  ;;  %v718_v27 = vmax.f32 %v716_v25, 0.0 }
 0x4da   :  { %v720_v28 = vsel %vm719_vm6, %v717_v26, -inf  ;;  %v727_v29 = vsel %vm719_vm6, %v718_v27, -inf  ;;  %v851_v30 = vpack.c.bf16 %v718_v27, %v717_v26  ;;  %v1075_v27 = vld [vmem:[#allocation17] sm:$0x1] }
 0x4db   :  { %v721_v31 = vrot.slane %v720_v28, 4  ;;  %v728_v33 = vrot.slane %v727_v29, 4 }
 0x4dc   :  { %1585 = vmatmul.mubr.msk.bf16.vlgmr.msra.gmra.mrb[8].mxu1 %vm719_vm6, %v851_v30  ;;  %v1079_v30 = vld [vmem:[#allocation19] sm:$0x1] }
 0x4dd   :  { %v722_v35 = vmax.f32 %v720_v28, %v721_v31  ;;  %v729_v36 = vmax.f32 %v727_v29, %v728_v33  ;;  %1610 = vmatprep.mubr.msk.bf16.mxu1 %vm2127_vm2, %v2125_v0  ;;  %1603 = vmatpush3.bf16.msra.mxu1 %v1697_v12 }
 0x4de   :  { %1604 = vmatprep.subr.bf16.mxu1 %v2125_v0 }
 0x4df   :  { %v723_v37 = vrot.slane %v722_v35, 2  ;;  %v730_v38 = vrot.slane %v729_v36, 2 }
 0x4e1   :  { %v724_v39 = vmax.f32 %v722_v35, %v723_v37  ;;  %v731_v40 = vmax.f32 %v729_v36, %v730_v38  ;;  %1605 = vmatpush3.bf16.msra.mxu1 %v1698_v13  ;;  %v1471_v13 = vld [vmem:[#allocation26] ss:$0 sm:$0xff] }
 0x4e2   :  { %1606 = vmatprep.subr.bf16.mxu1 %v2125_v0 }
 0x4e3   :  { %v725_v41 = vrot.slane %v724_v39, 1  ;;  %v732_v42 = vrot.slane %v731_v40, 1 }
 0x4e5   :  { %v726_v43 = vmax.f32 %v724_v39, %v725_v41  ;;  %v733_v44 = vmax.f32 %v731_v40, %v732_v42  ;;  %1607 = vmatpush3.bf16.msra.mxu1 %v1699_v14 }
 0x4e6   :  { %1608 = vmatprep.subr.bf16.mxu1 %v2125_v0 }
 0x4e7   :  { %v734_v45 = vpack.c.bf16 %v726_v43, %v726_v43  ;;  %v735_v46 = vpack.c.bf16 %v733_v44, %v733_v44 }
 0x4e9   :  { %v746_v47 = vunpack.c.l.b16 %v734_v45  ;;  %v747_v48 = vunpack.c.l.b16 %v735_v46  ;;  %1609 = vmatpush3.bf16.msra.mxu1 %v1700_v15 }
 0x4ea   :  { %1654 = vmatprep.subr.bf16.mxu1 %v2128_v9 }
 0x4eb   :  { %v749_v49 = vsel %vm748_vm7, %v747_v48, %v746_v47 }
 0x4ec   :  { %v750_v50 = vpack.c.b16 %v749_v49, %v749_v49 }
 0x4ee   :  { %1573 = vmatmul.mubr.msk.bf16.vlgmr.msra.gmra.mrb[8].mxu0 %vm719_vm6, %v750_v50 }
 0x4ef   :  { %1592 = vmatprep.mubr.msk.f32.mxu0 %vm2127_vm2, %v2125_v0 }
 0x5af   :  { %v921_v51 = vpop.f32.mrb[8].mxu1 }
 0x5b0   :  { %v1586_v52 = vpop.f32.mrb[9].mxu1 }
 0x5b1   :  { %v924_v53 = vpop.f32.mrb[10].mxu1  ;;  %v1702_v52 = vld [vmem:[#allocation25 + $0x8] sm:$0xff]  }
 0x5b2   :  { %v1587_v54 = vpop.f32.mrb[11].mxu1 }
 0x5c1   :  { %v812_v59 = vpop.f32.mrb[8].mxu0 }
 0x5c2   :  { %v825_v60 = vrot.slane %v812_v59, %v824_v58  ;;  %v1574_v61 = vpop.f32.mrb[9].mxu0 }
 0x5c3   :  { %v815_v62 = vpop.f32.mrb[10].mxu0 }
 0x5c4   :  { %v826_v63 = vcombine.high %v825_v60, %v825_v60  ;;  %v833_v1 = vrot.slane %v825_v60, %v824_v58  ;;  %v1575_v2 = vpop.f32.mrb[11].mxu0 }
 0x5c5   :  { %v1328_v2 = vld [vmem:[#allocation23] sm:$0x1] }
 0x5c6   :  { %v840_v3 = vrot.slane %v826_v63, %v824_v58  ;;  %v844_v4 = vrot.slane %v833_v1, %v2465_v34 }
 0x5c8   :  { %v848_v5 = vrot.slane %v840_v3, %v2465_v34  ;;  %v922_v6 = vadd.f32 %v921_v51, %v844_v4  ;;  %v1701_v51 = vld [vmem:[#allocation25] sm:$0xff]  }
 0x5ca   :  { %v925_v7 = vadd.f32 %v924_v53, %v848_v5  ;;  %v998_v11 = vmul.f32 %v922_v6, %v922_v6 }
 0x5cc   :  { %v1649_v8 = vpack.c.bf16 %v925_v7, %v922_v6  ;;  %v999_v10 = vmul.f32 %v925_v7, %v925_v7 }
 0x5ce   :  { %1650 = vmatpush3.bf16.msra.mxu0 %v1649_v8  ;;  %v1652_v32 = vpack.c.bf16 %v999_v10, %v998_v11 }
 0x5cf   :  { %1651 = vmatprep.subr.bf16.mxu0 %v2128_v9 }
 0x5d1   :  { %1593 = vmatmul.mubr.msk.f32.vlgmr.msra.gmra.mrb[12].mxu0 %vm308_vm4, %v2129_v18 }
 0x5d2   :  { %1653 = vmatpush3.bf16.msra.mxu0 %v1652_v32  ;;  %1599 = vmatprep.mubr.msk.f32.mxu0 %vm2127_vm2, %v2125_v0 }
 0x5d3   :  { %1657 = vmatprep.subr.bf16.mxu0 %v2128_v9 }
 0x5d5   :  { %1600 = vmatmul.mubr.msk.f32.vlgmr.msra.gmra.mrb[14].mxu0 %vm308_vm4, %v2129_v18 }
 0x5d6   :  { %1625 = vmatprep.mubr.msk.f32.mxu0 %vm2127_vm2, %v2125_v0 }
 0x6a4   :  { %v994_v16 = vpop.f32.mrb[12].mxu0 }
 0x6a5   :  { %v1070_v17 = vmul.f32 0.0625, %v994_v16  ;;  %v1594_v19 = vpop.f32.mrb[13].mxu0 }
 0x6a7   :  { %v1072_v21 = vmul.f32 %v1070_v17, %v1070_v17 }
 0x6a8   :  { %v1066_v20 = vpop.f32.mrb[14].mxu0 }
 0x6a9   :  { %v1071_v22 = vmul.f32 0.0625, %v1066_v20  ;;  %v1601_v23 = vpop.f32.mrb[15].mxu0 }
 0x6ab   :  { %v1073_v24 = vsub.f32 %v1071_v22, %v1072_v21 }
 0x6ad   :  { %v1074_v25 = vmax.f32 %v1073_v24, 0.0 }
 0x6af   :  { %v1076_v26 = vadd.f32 1e-05, %v1074_v25 }
 0x6b1   :  { %1707 = vrsqrt.f32 %v1076_v26 }
 0x6bb   :  { %v1708_v28 = vpop.eup %1707 }
 0x6bc   :  { %v1078_v29 = vmul.f32 %v1708_v28, %v1075_v27 }
 0x6be   :  { %v1080_v31 = vmul.f32 %v1078_v29, %v1070_v17  ;;  %v1086_v33 = vrot.slane %v1078_v29, %v2465_v34 }
 0x6c0   :  { %v1081_v35 = vsub.f32 %v1079_v30, %v1080_v31  ;;  %v1088_v9 = vmul.f32 %v1086_v33, %v922_v6  ;;  %v1089_v36 = vmul.f32 %v1086_v33, %v925_v7 }
 0x6c2   :  { %v1094_v37 = vrot.slane %v1081_v35, %v2465_v34 }
 0x6c4   :  { %v1096_v38 = vadd.f32 %v1094_v37, %v1088_v9  ;;  %v1097_v39 = vadd.f32 %v1094_v37, %v1089_v36 }
 0x6c6   :  { %v1098_v40 = vmax.f32 %v1096_v38, 0.0  ;;  %v1099_v41 = vmax.f32 %v1097_v39, 0.0 }
 0x6c8   :  { %v1100_v42 = vpack.c.bf16 %v1099_v41, %v1098_v40 }
 0x6ca   :  { %1611 = vmatmul.mubr.msk.bf16.vlgmr.msra.gmra.mrb[12].mxu1 %vm719_vm6, %v1100_v42 }
 0x6cb   :  { %1618 = vmatprep.mubr.msk.f32.mxu1 %vm2127_vm2, %v2125_v0 }
 0x79d   :  { %v1170_v43 = vpop.f32.mrb[12].mxu1 }
 0x79e   :  { %v1612_v44 = vpop.f32.mrb[13].mxu1  ;;  %v1247_v46 = vmul.f32 %v1170_v43, %v1170_v43 }
 0x79f   :  { %v1173_v45 = vpop.f32.mrb[14].mxu1 }
 0x7a0   :  { %v1655_v47 = vpack.c.bf16 %v1173_v45, %v1170_v43  ;;  %v1248_v48 = vmul.f32 %v1173_v45, %v1173_v45  ;;  %v1613_v49 = vpop.f32.mrb[15].mxu1 }
 0x7a2   :  { %v1658_v50 = vpack.c.bf16 %v1248_v48, %v1247_v46  ;;  %1656 = vmatpush3.bf16.msra.mxu1 %v1655_v47 }
 0x7a4   :  { %1659 = vmatpush3.bf16.msra.mxu0 %v1658_v50 }
 0x7a5   :  { %1619 = vmatmul.mubr.msk.f32.vlgmr.msra.gmra.mrb[16].mxu1 %vm308_vm4, %v2129_v18  ;;  %1628 = vmatprep.subr.bf16.mxu0 %v2125_v0 }
 0x7a7   :  { %1626 = vmatmul.mubr.msk.f32.vlgmr.msra.gmra.mrb[16].mxu0 %vm308_vm4, %v2129_v18  ;;  %v1324_v18 = vld [vmem:[#allocation22] sm:$0x1] }
 0x7a8   :  { %1632 = vmatprep.mubr.msk.bf16.mxu0 %vm2127_vm2, %v2125_v0  ;;  %1629 = vmatpush3.bf16.msra.mxu0 %v1701_v51 }
 0x7a9   :  { %1630 = vmatprep.subr.bf16.mxu0 %v2125_v0 }
 0x7ac   :  { %1631 = vmatpush3.bf16.msra.mxu0 %v1702_v52 }
 0x878   :  { %v1243_v53 = vpop.f32.mrb[16].mxu1 }
 0x879   :  { %v1319_v54 = vmul.f32 0.0625, %v1243_v53  ;;  %v1620_v55 = vpop.f32.mrb[17].mxu1 }
 0x87a   :  { %v1315_v56 = vpop.f32.mrb[16].mxu0 }
 0x87b   :  { %v1321_v57 = vmul.f32 %v1319_v54, %v1319_v54  ;;  %v1320_v58 = vmul.f32 0.0625, %v1315_v56  ;;  %v1627_v59 = vpop.f32.mrb[17].mxu0 }
 0x87d   :  { %v1322_v60 = vsub.f32 %v1320_v58, %v1321_v57 }
 0x87f   :  { %v1323_v61 = vmax.f32 %v1322_v60, 0.0 }
 0x881   :  { %v1325_v62 = vadd.f32 1e-05, %v1323_v61 }
 0x883   :  { %1709 = vrsqrt.f32 %v1325_v62 }
 0x88d   :  { %v1710_v63 = vpop.eup %1709 }
 0x88e   :  { %v1327_v1 = vmul.f32 %v1710_v63, %v1324_v18 }
 0x890   :  { %v1329_v3 = vmul.f32 %v1327_v1, %v1319_v54  ;;  %v1335_v4 = vrot.slane %v1327_v1, %v2465_v34 }
 0x892   :  { %v1330_v0 = vsub.f32 %v1328_v2, %v1329_v3  ;;  %v1337_v5 = vmul.f32 %v1335_v4, %v1170_v43  ;;  %v1338_v6 = vmul.f32 %v1335_v4, %v1173_v45 }
 0x894   :  { %v1343_v7 = vrot.slane %v1330_v0, %v2465_v34 }
 0x896   :  { %v1345_v8 = vadd.f32 %v1343_v7, %v1337_v5  ;;  %v1346_v10 = vadd.f32 %v1343_v7, %v1338_v6 }
 0x898   :  { %v1347_v11 = vmax.f32 %v1345_v8, 0.0  ;;  %v1348_v32 = vmax.f32 %v1346_v10, 0.0 }
 0x89a   :  { %v1349_v12 = vpack.c.bf16 %v1348_v32, %v1347_v11 }
 0x89c   :  { %1633 = vmatmul.mubr.msk.bf16.vlgmr.msra.gmra.mrb[20].mxu0 %vm502_vm5, %v1349_v12 }
 0x96f   :  { %v1410_v14 = vpop.f32.mrb[20].mxu0 }
 0x970   :  { %v1411_v15 = vadd.f32 %v1471_v13, %v1410_v14  ;;  %v1634_v16 = vpop.f32.mrb[21].mxu0 }
 0x971   :  { %v1413_v17 = vpop.f32.mrb[22].mxu0 }
 0x972   :  { %1417 = vst [vmem:[#allocation28] sm:$0xff] %v1411_v15  ;;  %v1414_v19 = vadd.f32 %v1471_v13, %v1413_v17  ;;  %v1635_v20 = vpop.f32.mrb[23].mxu0 }
 0x974   :  { %1418 = vst [vmem:[#allocation28 + $0x8] sm:$0xff] %v1414_v19 }
 0x975   :  { %2074 = shalt.err (!%p2071_p6)
}
 0x976   :  { %s2075_s4 = scalar_lea.hbm %s2564_s16, 256 }
 0x977   :  { %p2076_p7 = scmp.ne.s32.totalorder %s2564_s16, %s2075_s4  ;;  %p2079_p8 = scmp.lt.u32.totalorder %s2075_s4, %s2564_s16 }
 0x979   :  { %p2081_p9 = pnand %p2079_p8, %p2076_p7 }
 0x97b   :  { %2084 = shalt.err (!%p2081_p9)
}
 0x97c   :  { %1430 = dma.vmem_to_hbm [thread:$0]  %s1425_s26, 256, %s2564_s16, [#allocation4], %s2115_s13, %s2115_s13, %s2116_s27  }
 0x97d   :  { %2103 = dma.done.wait [#allocation4], 256  }
 0x97e   :  { %2104 = vsyncadd [#allocation4], 4294967040 }
 0x97f   :  { %1434 = vsyncpa [#allocation3], 1 }
 0x980   :  { %1435 = vsyncpa [#allocation6], 1 }
 0x981   :  { %1436 = vsyncpa [#allocation9], 1 }
 0x982   :  { %1437 = vsyncpa [#allocation12], 1 }
 0x983   :  { %1438 = vsyncpa [#allocation15], 1 }
 0x984   :  { %1439 = vsyncpa [#allocation18], 1 }
 0x985   :  { %1440 = vsyncpa [#allocation21], 1 }
 0x986   :  { %1441 = vsyncpa [#allocation24], 1 }
 0x987   :  { %1442 = vsyncpa [#allocation27], 1 }
 0x988   :  { %1443 = vsyncpa [#allocation4], 1 }

</bundles_post_ra>
